<compile_context>
chip_gen: v5e
topology: v5e:2x2
jax: 0.10.0
libtpu: 0.0.40
codegen_flags: <defaults>
</compile_context>

<pallas_src>
import functools

import jax
import jax.numpy as jnp
from jax.experimental import pallas as pl
from jax.experimental.pallas import tpu as pltpu

_LANE = 128
_SUBLANE = 8


def _round_up(v, m):
    return ((v + m - 1) // m) * m


# --------------------------------------------------------------------------
# Fused MLP kernel: out = relu(x @ W1t + b1) @ W2t + b2
# All shapes lane-padded to multiples of 128; hidden never leaves VMEM/vregs.
# --------------------------------------------------------------------------
def _mlp_kernel(x_ref, w1_ref, b1_ref, w2_ref, b2_ref, o_ref):
    # (tile, Kp) @ (Kp, Hp) -> (tile, Hp), f32 accumulation on the MXU.
    h = jnp.dot(x_ref[...], w1_ref[...], preferred_element_type=jnp.float32)
    h = jnp.maximum(h + b1_ref[...], 0.0)          # bias + ReLU (dense VPU)
    # (tile, Hp) @ (Hp, Cp) -> (tile, Cp); lane-dense unmasked store.
    o = jnp.dot(h, w2_ref[...], preferred_element_type=jnp.float32)
    o_ref[...] = (o + b2_ref[...]).astype(o_ref.dtype)


# --------------------------------------------------------------------------
# One-time parameter prep: transpose (PyTorch Linear stores (out, in)) and
# zero-pad to lane-aligned shapes.  Done OUTSIDE the jitted forward.
# --------------------------------------------------------------------------
def prepare_params(w1, b1, w2, b2):
    H, K = w1.shape            # fc1: (50, 784)
    C = w2.shape[0]            # fc2: (10, 50)
    Kp = _round_up(K, _LANE)   # 896
    Hp = _round_up(H, _LANE)   # 128
    Cp = _round_up(C, _LANE)   # 128

    w1_p = jnp.zeros((Kp, Hp), jnp.float32).at[:K, :H].set(w1.T)
    b1_p = jnp.zeros((1, Hp), jnp.float32).at[0, :H].set(b1)
    w2_p = jnp.zeros((Hp, Cp), jnp.float32).at[:H, :C].set(w2.T)
    b2_p = jnp.zeros((1, Cp), jnp.float32).at[0, :C].set(b2)
    return w1_p, b1_p, w2_p, b2_p


# --------------------------------------------------------------------------
# Fused forward pass
# --------------------------------------------------------------------------
def mlp_forward(x, w1_p, b1_p, w2_p, b2_p, *, num_classes, bm=512):
    """x: (M, K) input batch; padded params from prepare_params."""
    M, K = x.shape
    Kp, Hp = w1_p.shape
    Cp = w2_p.shape[1]

    # Pad the contraction dim (zero columns x zero W1 rows -> no contribution).
    if Kp != K:
        x = jnp.pad(x, ((0, 0), (0, Kp - K)))

    # Bounded batch tile: multiple of 8 sublanes; single grid step when M <= bm.
    tile = min(_round_up(max(M, 1), _SUBLANE), _round_up(bm, _SUBLANE))
    Mp = _round_up(M, tile)
    if Mp != M:
        x = jnp.pad(x, ((0, Mp - M), (0, 0)))

    grid = (Mp // tile,)
    out = pl.pallas_call(
        _mlp_kernel,
        out_shape=jax.ShapeDtypeStruct((Mp, Cp), jnp.float32),
        grid=grid,
        in_specs=[
            pl.BlockSpec((tile, Kp), lambda i: (i, 0)),   # x tile
            pl.BlockSpec((Kp, Hp), lambda i: (0, 0)),     # W1^T (resident)
            pl.BlockSpec((1, Hp), lambda i: (0, 0)),      # b1
            pl.BlockSpec((Hp, Cp), lambda i: (0, 0)),     # W2^T (resident)
            pl.BlockSpec((1, Cp), lambda i: (0, 0)),      # b2
        ],
        out_specs=pl.BlockSpec((tile, Cp), lambda i: (i, 0)),
        compiler_params=pltpu.CompilerParams(
            dimension_semantics=("parallel",),            # megacore when grid >= 2
        ),
    )(x, w1_p, b1_p, w2_p, b2_p)

    # Slice away batch padding and the zero-padded class columns.
    return out[:M, :num_classes]


# --------------------------------------------------------------------------
# Pure-JAX reference (PyTorch semantics) for validation
# --------------------------------------------------------------------------
def mlp_reference(x, w1, b1, w2, b2):
    h = jax.nn.relu(x @ w1.T + b1)
    return h @ w2.T + b2


if __name__ == "__main__":
    # Module: NN(input_size=784, num_classes=10); hidden fixed at 50.
    batch, input_size, hidden, num_classes = 16, 784, 50, 10

    key = jax.random.PRNGKey(0)
    k = jax.random.split(key, 5)
    x = jax.random.normal(k[0], (batch, input_size), jnp.float32)

    # PyTorch Linear stores (out_features, in_features).
    w1 = jax.random.normal(k[1], (hidden, input_size), jnp.float32) * 0.05
    b1 = jax.random.normal(k[2], (hidden,), jnp.float32) * 0.05
    w2 = jax.random.normal(k[3], (num_classes, hidden), jnp.float32) * 0.05
    b2 = jax.random.normal(k[4], (num_classes,), jnp.float32) * 0.05

    # Transpose + lane-pad parameters ONCE, outside the jitted forward.
    w1_p, b1_p, w2_p, b2_p = prepare_params(w1, b1, w2, b2)

    fwd = jax.jit(functools.partial(mlp_forward, num_classes=num_classes, bm=512))
    out = fwd(x, w1_p, b1_p, w2_p, b2_p)   # batch=16 -> tile=16, grid=(1,)
    out = jax.block_until_ready(out)

    ref = mlp_reference(x, w1, b1, w2, b2)
    assert out.shape == (batch, num_classes), out.shape
    assert jnp.allclose(out, ref, atol=1e-3, rtol=1e-3), float(
        jnp.max(jnp.abs(out - ref)))
    print("KERNEL_OK")
</pallas_src>

<mosaic_0001>
module attributes {stable_mosaic.version = 11 : i64} {
  func.func @_mlp_kernel(%arg0: i32, %arg1: memref<16x896xf32, #tpu.memory_space<vmem>>, %arg2: memref<896x128xf32, #tpu.memory_space<vmem>>, %arg3: memref<1x128xf32, #tpu.memory_space<vmem>>, %arg4: memref<128x128xf32, #tpu.memory_space<vmem>>, %arg5: memref<1x128xf32, #tpu.memory_space<vmem>>, %arg6: memref<16x128xf32, #tpu.memory_space<vmem>>) attributes {dimension_semantics = [#tpu.dimension_semantics<parallel>], iteration_bounds = array<i64: 1>, scalar_prefetch = 0 : i64, scratch_operands = 0 : i64, tpu.core_type = #tpu.core_type<tc>, window_params = [{transform_indices = @transform_0, window_bounds = array<i64: 16, 896>}, {pipeline_mode = #tpu.pipeline_mode<synchronous>, transform_indices = @transform_1, window_bounds = array<i64: 896, 128>}, {pipeline_mode = #tpu.pipeline_mode<synchronous>, transform_indices = @transform_2, window_bounds = array<i64: 1, 128>}, {pipeline_mode = #tpu.pipeline_mode<synchronous>, transform_indices = @transform_3, window_bounds = array<i64: 128, 128>}, {pipeline_mode = #tpu.pipeline_mode<synchronous>, transform_indices = @transform_4, window_bounds = array<i64: 1, 128>}, {transform_indices = @transform_5, window_bounds = array<i64: 16, 128>}]} {
    %c0 = arith.constant 0 : index
    %c0_0 = arith.constant 0 : index
    %0 = vector.load %arg1[%c0, %c0_0] : memref<16x896xf32, #tpu.memory_space<vmem>>, vector<16x896xf32>
    %c0_1 = arith.constant 0 : index
    %c0_2 = arith.constant 0 : index
    %1 = vector.load %arg2[%c0_1, %c0_2] : memref<896x128xf32, #tpu.memory_space<vmem>>, vector<896x128xf32>
    %cst = arith.constant dense<0.000000e+00> : vector<16x128xf32>
    %2 = tpu.matmul %0, %1, %cst {dimension_numbers = #tpu.dot_dimension_numbers<[1], [0], [0], [1], [0, 0, 1, 1], [], []>} : vector<16x896xf32>, vector<896x128xf32>, vector<16x128xf32> -> vector<16x128xf32>
    %c0_3 = arith.constant 0 : index
    %c0_4 = arith.constant 0 : index
    %3 = vector.load %arg3[%c0_3, %c0_4] : memref<1x128xf32, #tpu.memory_space<vmem>>, vector<1x128xf32>
    %4 = vector.broadcast %3 : vector<1x128xf32> to vector<16x128xf32>
    %5 = arith.addf %2, %4 : vector<16x128xf32>
    %cst_5 = arith.constant 0.000000e+00 : f32
    %6 = vector.broadcast %cst_5 : f32 to vector<16x128xf32>
    %7 = arith.maximumf %5, %6 : vector<16x128xf32>
    %c0_6 = arith.constant 0 : index
    %c0_7 = arith.constant 0 : index
    %8 = vector.load %arg4[%c0_6, %c0_7] : memref<128x128xf32, #tpu.memory_space<vmem>>, vector<128x128xf32>
    %cst_8 = arith.constant dense<0.000000e+00> : vector<16x128xf32>
    %9 = tpu.matmul %7, %8, %cst_8 {dimension_numbers = #tpu.dot_dimension_numbers<[1], [0], [0], [1], [0, 0, 1, 1], [], []>} : vector<16x128xf32>, vector<128x128xf32>, vector<16x128xf32> -> vector<16x128xf32>
    %c0_9 = arith.constant 0 : index
    %c0_10 = arith.constant 0 : index
    %10 = vector.load %arg5[%c0_9, %c0_10] : memref<1x128xf32, #tpu.memory_space<vmem>>, vector<1x128xf32>
    %11 = vector.broadcast %10 : vector<1x128xf32> to vector<16x128xf32>
    %12 = arith.addf %9, %11 : vector<16x128xf32>
    %c0_11 = arith.constant 0 : index
    %c0_12 = arith.constant 0 : index
    %13 = vector.load %arg6[%c0_11, %c0_12] : memref<16x128xf32, #tpu.memory_space<vmem>>, vector<16x128xf32>
    tpu.vector_store %arg6[%c0_11, %c0_12], %12 {strides = array<i32>} : memref<16x128xf32, #tpu.memory_space<vmem>>, vector<16x128xf32>,
    return
  }
  func.func @transform_0(%arg0: i32) -> (i32, i32) {
    %c0_i32 = arith.constant 0 : i32
    %c0_i32_0 = arith.constant 0 : i32
    return %arg0, %c0_i32 : i32, i32
  }
  func.func @transform_1(%arg0: i32) -> (i32, i32) {
    %c0_i32 = arith.constant 0 : i32
    %c0_i32_0 = arith.constant 0 : i32
    %c0_i32_1 = arith.constant 0 : i32
    return %c0_i32, %c0_i32_0 : i32, i32
  }
  func.func @transform_2(%arg0: i32) -> (i32, i32) {
    %c0_i32 = arith.constant 0 : i32
    %c0_i32_0 = arith.constant 0 : i32
    %c0_i32_1 = arith.constant 0 : i32
    return %c0_i32, %c0_i32_0 : i32, i32
  }
  func.func @transform_3(%arg0: i32) -> (i32, i32) {
    %c0_i32 = arith.constant 0 : i32
    %c0_i32_0 = arith.constant 0 : i32
    %c0_i32_1 = arith.constant 0 : i32
    return %c0_i32, %c0_i32_0 : i32, i32
  }
  func.func @transform_4(%arg0: i32) -> (i32, i32) {
    %c0_i32 = arith.constant 0 : i32
    %c0_i32_0 = arith.constant 0 : i32
    %c0_i32_1 = arith.constant 0 : i32
    return %c0_i32, %c0_i32_0 : i32, i32
  }
  func.func @transform_5(%arg0: i32) -> (i32, i32) {
    %c0_i32 = arith.constant 0 : i32
    %c0_i32_0 = arith.constant 0 : i32
    return %arg0, %c0_i32 : i32, i32
  }
}

</mosaic_0001>

<bundles_post_ra>
// kernel: mlp_forward.1
= control target key start
LH: loop header
LB: loop body
LE: loop exit
PB: predicated region body
PF: predicated region fallthrough
CT: control target
= control target key end

     0   :  { %10 = vsyncpa [#allocation3], 0  ;;  %s594_s0 = inlined_call_operand.vmem [shape: f32[16,896], index: 0, kind: input, shape index: {}]   ;;  %s595_s1 = inlined_call_operand.hbm [shape: f32[896,128], index: 1, kind: input, shape index: {}]   ;;  %s596_s2 = inlined_call_operand.vmem [shape: f32[1,128], index: 2, kind: input, shape index: {}]   ;;  %s597_s3 = inlined_call_operand.vmem [shape: f32[128,128], index: 3, kind: input, shape index: {}]   ;;  %s598_s4 = inlined_call_operand.vmem [shape: f32[1,128], index: 4, kind: input, shape index: {}]   ;;  %s599_s5 = inlined_call_operand.hbm [shape: f32[16,128], index: 5, kind: output, shape index: {}]  }
   0x1   :  { %11 = vsyncpa [#allocation4], 0  ;;  %s18_s20 = sshll.u32 %s595_s1, 4  ;;  %s452_s21 = smov [#allocation2]   ;;  %s19_s20 = int_to_ptr.hbm [resolvable:$true] %s18_s20 }
   0x2   :  { %s20_s22 = sshll.u32 %s452_s21, 4  ;;  %s453_s23 = smov 128   ;;  %s21_s22 = int_to_ptr.vmem [resolvable:$true] %s20_s22 }
   0x3   :  { %s454_s24 = smov 8  }
   0x4   :  { %26 = dma.hbm_to_vmem [thread:$0]  %s19_s20, 14336, %s21_s22, [#allocation3], %s453_s23, %s453_s23, %s454_s24  }
   0x5   :  { %448 = dma.done.wait [#allocation3], 14336  }
   0x6   :  { %449 = vsyncadd [#allocation3], 4294952960  ;;  %v66_v0 = vld [vmem:[#allocation2 + $0x78] sm:$0xff]  ;;  %v65_v2 = vld [vmem:[#allocation2 + $0x70] sm:$0xff]  ;;  %s455_s12 = smov [#allocation5]   ;;  %s381_s15 = sshll.u32 %s599_s5, 4  ;;  %s382_s15 = int_to_ptr.hbm [resolvable:$true] %s381_s15 }
   0x7   :  { %v98_v1 = vld [vmem:[#allocation2 + $0x178] sm:$0xff]  ;;  %167 = vmatpush.msra.mxu0 %v66_v0  ;;  %v97_v4 = vld [vmem:[#allocation2 + $0x170] sm:$0xff]  ;;  %v64_v5 = vld [vmem:[#allocation2 + $0x68] sm:$0xff]  ;;  %s379_s13 = sshll.u32 %s455_s12, 4  ;;  %s380_s13 = int_to_ptr.vmem [resolvable:$true] %s379_s13 }
   0x8   :  { %213 = vmatpush.msra.mxu2 %v98_v1  ;;  %v82_v3 = vld [vmem:[#allocation2 + $0xf8] sm:$0xff]  ;;  %v81_v6 = vld [vmem:[#allocation2 + $0xf0] sm:$0xff]  ;;  %v96_v7 = vld [vmem:[#allocation2 + $0x168] sm:$0xff] }
   0x9   :  { %190 = vmatpush.msra.mxu1 %v82_v3  ;;  %168 = vmatpush.msra.mxu0 %v65_v2  ;;  %v80_v8 = vld [vmem:[#allocation2 + $0xe8] sm:$0xff]  ;;  %v63_v9 = vld [vmem:[#allocation2 + $0x60] sm:$0xff]  ;;  %v62_v12 = vld [vmem:[#allocation2 + $0x58] sm:$0xff] }
   0xa   :  { %214 = vmatpush.msra.mxu2 %v97_v4  ;;  %v95_v10 = vld [vmem:[#allocation2 + $0x160] sm:$0xff]  ;;  %v94_v13 = vld [vmem:[#allocation2 + $0x158] sm:$0xff]  ;;  %v61_v15 = vld [vmem:[#allocation2 + $0x50] sm:$0xff] }
   0xb   :  { %191 = vmatpush.msra.mxu1 %v81_v6  ;;  %169 = vmatpush.msra.mxu0 %v64_v5  ;;  %v79_v11 = vld [vmem:[#allocation2 + $0xe0] sm:$0xff]  ;;  %v78_v14 = vld [vmem:[#allocation2 + $0xd8] sm:$0xff]  ;;  %v93_v16 = vld [vmem:[#allocation2 + $0x150] sm:$0xff] }
   0xc   :  { %215 = vmatpush.msra.mxu2 %v96_v7  ;;  %v114_v17 = vld [vmem:[#allocation2 + $0x1f8] sm:$0xff]  ;;  %v77_v18 = vld [vmem:[#allocation2 + $0xd0] sm:$0xff]  ;;  %v60_v19 = vld [vmem:[#allocation2 + $0x48] sm:$0xff] }
   0xd   :  { %192 = vmatpush.msra.mxu1 %v80_v8  ;;  %170 = vmatpush.msra.mxu0 %v63_v9  ;;  %v92_v20 = vld [vmem:[#allocation2 + $0x148] sm:$0xff]  ;;  %v113_v21 = vld [vmem:[#allocation2 + $0x1f0] sm:$0xff]  ;;  %v59_v24 = vld [vmem:[#allocation2 + $0x40] sm:$0xff] }
   0xe   :  { %216 = vmatpush.msra.mxu2 %v95_v10  ;;  %236 = vmatpush.msra.mxu3 %v114_v17  ;;  %v76_v22 = vld [vmem:[#allocation2 + $0xc8] sm:$0xff]  ;;  %v91_v25 = vld [vmem:[#allocation2 + $0x140] sm:$0xff]  ;;  %v58_v28 = vld [vmem:[#allocation2 + $0x38] sm:$0xff] }
   0xf   :  { %193 = vmatpush.msra.mxu1 %v79_v11  ;;  %171 = vmatpush.msra.mxu0 %v62_v12  ;;  %v112_v23 = vld [vmem:[#allocation2 + $0x1e8] sm:$0xff]  ;;  %v75_v26 = vld [vmem:[#allocation2 + $0xc0] sm:$0xff]  ;;  %v90_v29 = vld [vmem:[#allocation2 + $0x138] sm:$0xff] }
  0x10   :  { %217 = vmatpush.msra.mxu2 %v94_v13  ;;  %237 = vmatpush.msra.mxu3 %v113_v21  ;;  %v111_v27 = vld [vmem:[#allocation2 + $0x1e0] sm:$0xff]  ;;  %v74_v30 = vld [vmem:[#allocation2 + $0xb8] sm:$0xff]  ;;  %v57_v32 = vld [vmem:[#allocation2 + $0x30] sm:$0xff] }
  0x11   :  { %194 = vmatpush.msra.mxu1 %v78_v14  ;;  %172 = vmatpush.msra.mxu0 %v61_v15  ;;  %v110_v31 = vld [vmem:[#allocation2 + $0x1d8] sm:$0xff]  ;;  %v89_v33 = vld [vmem:[#allocation2 + $0x130] sm:$0xff]  ;;  %v56_v36 = vld [vmem:[#allocation2 + $0x28] sm:$0xff] }
  0x12   :  { %218 = vmatpush.msra.mxu2 %v93_v16  ;;  %238 = vmatpush.msra.mxu3 %v112_v23  ;;  %v73_v34 = vld [vmem:[#allocation2 + $0xb0] sm:$0xff]  ;;  %v88_v37 = vld [vmem:[#allocation2 + $0x128] sm:$0xff]  ;;  %v55_v40 = vld [vmem:[#allocation2 + $0x20] sm:$0xff] }
  0x13   :  { %195 = vmatpush.msra.mxu1 %v77_v18  ;;  %173 = vmatpush.msra.mxu0 %v60_v19  ;;  %v109_v35 = vld [vmem:[#allocation2 + $0x1d0] sm:$0xff]  ;;  %v72_v38 = vld [vmem:[#allocation2 + $0xa8] sm:$0xff]  ;;  %v87_v41 = vld [vmem:[#allocation2 + $0x120] sm:$0xff] }
  0x14   :  { %219 = vmatpush.msra.mxu2 %v92_v20  ;;  %239 = vmatpush.msra.mxu3 %v111_v27  ;;  %v108_v39 = vld [vmem:[#allocation2 + $0x1c8] sm:$0xff]  ;;  %v71_v42 = vld [vmem:[#allocation2 + $0xa0] sm:$0xff]  ;;  %v54_v44 = vld [vmem:[#allocation2 + $0x18] sm:$0xff] }
  0x15   :  { %196 = vmatpush.msra.mxu1 %v76_v22  ;;  %174 = vmatpush.msra.mxu0 %v59_v24  ;;  %v107_v43 = vld [vmem:[#allocation2 + $0x1c0] sm:$0xff]  ;;  %v86_v45 = vld [vmem:[#allocation2 + $0x118] sm:$0xff]  ;;  %v53_v48 = vld [vmem:[#allocation2 + $0x10] sm:$0xff] }
  0x16   :  { %220 = vmatpush.msra.mxu2 %v91_v25  ;;  %240 = vmatpush.msra.mxu3 %v110_v31  ;;  %v70_v46 = vld [vmem:[#allocation2 + $0x98] sm:$0xff]  ;;  %v85_v49 = vld [vmem:[#allocation2 + $0x110] sm:$0xff]  ;;  %v52_v52 = vld [vmem:[#allocation2 + $0x8] sm:$0xff] }
  0x17   :  { %197 = vmatpush.msra.mxu1 %v75_v26  ;;  %175 = vmatpush.msra.mxu0 %v58_v28  ;;  %v106_v47 = vld [vmem:[#allocation2 + $0x1b8] sm:$0xff]  ;;  %v69_v50 = vld [vmem:[#allocation2 + $0x90] sm:$0xff]  ;;  %v84_v53 = vld [vmem:[#allocation2 + $0x108] sm:$0xff] }
  0x18   :  { %221 = vmatpush.msra.mxu2 %v90_v29  ;;  %241 = vmatpush.msra.mxu3 %v109_v35  ;;  %v105_v51 = vld [vmem:[#allocation2 + $0x1b0] sm:$0xff]  ;;  %v68_v54 = vld [vmem:[#allocation2 + $0x88] sm:$0xff]  ;;  %v51_v56 = vld [vmem:[#allocation2] sm:$0xff] }
  0x19   :  { %198 = vmatpush.msra.mxu1 %v74_v30  ;;  %176 = vmatpush.msra.mxu0 %v57_v32  ;;  %v104_v55 = vld [vmem:[#allocation2 + $0x1a8] sm:$0xff]  ;;  %v83_v57 = vld [vmem:[#allocation2 + $0x100] sm:$0xff]  ;;  %v130_v58 = vld [vmem:[#allocation2 + $0x278] sm:$0xff] }
  0x1a   :  { %222 = vmatpush.msra.mxu2 %v89_v33  ;;  %242 = vmatpush.msra.mxu3 %v108_v39  ;;  %v162_v59 = vld [vmem:[#allocation2 + $0x378] sm:$0xff]  ;;  %v67_v60 = vld [vmem:[#allocation2 + $0x80] sm:$0xff]  ;;  %v129_v62 = vld [vmem:[#allocation2 + $0x270] sm:$0xff] }
  0x1b   :  { %199 = vmatpush.msra.mxu1 %v73_v34  ;;  %177 = vmatpush.msra.mxu0 %v56_v36  ;;  %v103_v61 = vld [vmem:[#allocation2 + $0x1a0] sm:$0xff]  ;;  %v146_v63 = vld [vmem:[#allocation2 + $0x2f8] sm:$0xff]  ;;  %v161_v0 = vld [vmem:[#allocation2 + $0x370] sm:$0xff] }
  0x1c   :  { %223 = vmatpush.msra.mxu2 %v88_v37  ;;  %243 = vmatpush.msra.mxu3 %v107_v43  ;;  %v102_v1 = vld [vmem:[#allocation2 + $0x198] sm:$0xff]  ;;  %v128_v2 = vld [vmem:[#allocation2 + $0x268] sm:$0xff]  ;;  %v145_v3 = vld [vmem:[#allocation2 + $0x2f0] sm:$0xff] }
  0x1d   :  { %200 = vmatpush.msra.mxu1 %v72_v38  ;;  %178 = vmatpush.msra.mxu0 %v55_v40  ;;  %v160_v4 = vld [vmem:[#allocation2 + $0x368] sm:$0xff]  ;;  %v101_v5 = vld [vmem:[#allocation2 + $0x190] sm:$0xff]  ;;  %v127_v6 = vld [vmem:[#allocation2 + $0x260] sm:$0xff] }
  0x1e   :  { %224 = vmatpush.msra.mxu2 %v87_v41  ;;  %244 = vmatpush.msra.mxu3 %v106_v47  ;;  %v144_v7 = vld [vmem:[#allocation2 + $0x2e8] sm:$0xff]  ;;  %v159_v8 = vld [vmem:[#allocation2 + $0x360] sm:$0xff]  ;;  %v126_v10 = vld [vmem:[#allocation2 + $0x258] sm:$0xff] }
  0x1f   :  { %201 = vmatpush.msra.mxu1 %v71_v42  ;;  %179 = vmatpush.msra.mxu0 %v54_v44  ;;  %v100_v9 = vld [vmem:[#allocation2 + $0x188] sm:$0xff]  ;;  %v143_v11 = vld [vmem:[#allocation2 + $0x2e0] sm:$0xff]  ;;  %v158_v12 = vld [vmem:[#allocation2 + $0x358] sm:$0xff] }
  0x20   :  { %225 = vmatpush.msra.mxu2 %v86_v45  ;;  %245 = vmatpush.msra.mxu3 %v105_v51  ;;  %v37_v13 = vld [vmem:[%s594_s0] sm:$0xff]  ;;  %v125_v14 = vld [vmem:[#allocation2 + $0x250] sm:$0xff]  ;;  %v142_v15 = vld [vmem:[#allocation2 + $0x2d8] sm:$0xff] }
  0x21   :  { %202 = vmatpush.msra.mxu1 %v70_v46  ;;  %180 = vmatpush.msra.mxu0 %v53_v48  ;;  %v157_v16 = vld [vmem:[#allocation2 + $0x350] sm:$0xff]  ;;  %v99_v17 = vld [vmem:[#allocation2 + $0x180] sm:$0xff]  ;;  %v124_v18 = vld [vmem:[#allocation2 + $0x248] sm:$0xff] }
  0x22   :  { %226 = vmatpush.msra.mxu2 %v85_v49  ;;  %246 = vmatpush.msra.mxu3 %v104_v55  ;;  %v141_v19 = vld [vmem:[#allocation2 + $0x2d0] sm:$0xff]  ;;  %v156_v20 = vld [vmem:[#allocation2 + $0x348] sm:$0xff]  ;;  %v123_v22 = vld [vmem:[#allocation2 + $0x240] sm:$0xff] }
  0x23   :  { %203 = vmatpush.msra.mxu1 %v69_v50  ;;  %181 = vmatpush.msra.mxu0 %v52_v52  ;;  %v38_v21 = vld [vmem:[%s594_s0 + $0x8] sm:$0xff]  ;;  %v155_v24 = vld [vmem:[#allocation2 + $0x340] sm:$0xff]  ;;  %v40_v25 = vld [vmem:[%s594_s0 + $0x18] sm:$0xff] }
  0x24   :  { %227 = vmatpush.msra.mxu2 %v84_v53  ;;  %247 = vmatpush.msra.mxu3 %v103_v61  ;;  %v140_v23 = vld [vmem:[#allocation2 + $0x2c8] sm:$0xff]  ;;  %v39_v26 = vld [vmem:[%s594_s0 + $0x10] sm:$0xff]  ;;  %v122_v27 = vld [vmem:[#allocation2 + $0x238] sm:$0xff] }
  0x25   :  { %204 = vmatpush.msra.mxu1 %v68_v54  ;;  %182 = vmatpush.msra.mxu0 %v51_v56  ;;  %v139_v28 = vld [vmem:[#allocation2 + $0x2c0] sm:$0xff]  ;;  %v154_v29 = vld [vmem:[#allocation2 + $0x338] sm:$0xff]  ;;  %v121_v30 = vld [vmem:[#allocation2 + $0x230] sm:$0xff] }
  0x26   :  { %228 = vmatpush.msra.mxu2 %v83_v57  ;;  %248 = vmatpush.msra.mxu3 %v102_v1  ;;  %v345_v31 = vld [vmem:[%s597_s3 + $0x78] sm:$0xff]  ;;  %v153_v33 = vld [vmem:[#allocation2 + $0x330] sm:$0xff]  ;;  %v120_v34 = vld [vmem:[#allocation2 + $0x228] sm:$0xff] }
  0x27   :  { %259 = vmatpush.msrb.mxu0 %v130_v58  ;;  %205 = vmatpush.msra.mxu1 %v67_v60  ;;  %v138_v32 = vld [vmem:[#allocation2 + $0x2b8] sm:$0xff]  ;;  %v344_v35 = vld [vmem:[%s597_s3 + $0x70] sm:$0xff]  ;;  %v152_v37 = vld [vmem:[#allocation2 + $0x328] sm:$0xff] }
  0x28   :  { %305 = vmatpush.msrb.mxu2 %v162_v59  ;;  %249 = vmatpush.msra.mxu3 %v101_v5  ;;  %v137_v36 = vld [vmem:[#allocation2 + $0x2b0] sm:$0xff]  ;;  %v119_v38 = vld [vmem:[#allocation2 + $0x220] sm:$0xff]  ;;  %v136_v40 = vld [vmem:[#allocation2 + $0x2a8] sm:$0xff] }
  0x29   :  { %260 = vmatpush.msrb.mxu0 %v129_v62  ;;  %282 = vmatpush.msrb.mxu1 %v146_v63  ;;  %v45_v39 = vld [vmem:[%s594_s0 + $0x40] sm:$0xff]  ;;  %v44_v42 = vld [vmem:[%s594_s0 + $0x38] sm:$0xff]  ;;  %v46_v43 = vld [vmem:[%s594_s0 + $0x48] sm:$0xff] }
  0x2a   :  { %306 = vmatpush.msrb.mxu2 %v161_v0  ;;  %250 = vmatpush.msra.mxu3 %v100_v9  ;;  %v151_v41 = vld [vmem:[#allocation2 + $0x320] sm:$0xff]  ;;  %v118_v44 = vld [vmem:[#allocation2 + $0x218] sm:$0xff]  ;;  %v47_v47 = vld [vmem:[%s594_s0 + $0x50] sm:$0xff] }
  0x2b   :  { %261 = vmatpush.msrb.mxu0 %v128_v2  ;;  %283 = vmatpush.msrb.mxu1 %v145_v3  ;;  %v135_v45 = vld [vmem:[#allocation2 + $0x2a0] sm:$0xff]  ;;  %v150_v46 = vld [vmem:[#allocation2 + $0x318] sm:$0xff]  ;;  %v117_v48 = vld [vmem:[#allocation2 + $0x210] sm:$0xff] }
  0x2c   :  { %307 = vmatpush.msrb.mxu2 %v160_v4  ;;  %183 = vmatmul.f32.vlgmr.msra.gmra.mxu0 %v37_v13  ;;  %v134_v49 = vld [vmem:[#allocation2 + $0x298] sm:$0xff]  ;;  %v149_v50 = vld [vmem:[#allocation2 + $0x310] sm:$0xff]  ;;  %v116_v51 = vld [vmem:[#allocation2 + $0x208] sm:$0xff] }
  0x2d   :  { %262 = vmatpush.msrb.mxu0 %v127_v6  ;;  %284 = vmatpush.msrb.mxu1 %v144_v7  ;;  %v133_v52 = vld [vmem:[#allocation2 + $0x290] sm:$0xff]  ;;  %v148_v53 = vld [vmem:[#allocation2 + $0x308] sm:$0xff]  ;;  %v115_v54 = vld [vmem:[#allocation2 + $0x200] sm:$0xff] }
  0x2e   :  { %308 = vmatpush.msrb.mxu2 %v159_v8  ;;  %251 = vmatpush.msra.mxu3 %v99_v17  ;;  %v132_v55 = vld [vmem:[#allocation2 + $0x288] sm:$0xff]  ;;  %v147_v56 = vld [vmem:[#allocation2 + $0x300] sm:$0xff]  ;;  %v43_v58 = vld [vmem:[%s594_s0 + $0x30] sm:$0xff] }
  0x2f   :  { %263 = vmatpush.msrb.mxu0 %v126_v10  ;;  %285 = vmatpush.msrb.mxu1 %v143_v11  ;;  %v41_v57 = vld [vmem:[%s594_s0 + $0x20] sm:$0xff]  ;;  %v42_v60 = vld [vmem:[%s594_s0 + $0x28] sm:$0xff]  ;;  %v48_v61 = vld [vmem:[%s594_s0 + $0x58] sm:$0xff] }
  0x30   :  { %309 = vmatpush.msrb.mxu2 %v158_v12  ;;  %206 = vmatmul.f32.vlgmr.msra.gmra.mxu1 %v38_v21  ;;  %v131_v59 = vld [vmem:[#allocation2 + $0x280] sm:$0xff]  ;;  %v50_v62 = vld [vmem:[%s594_s0 + $0x68] sm:$0xff]  ;;  %v341_v2 = vld [vmem:[%s597_s3 + $0x58] sm:$0xff] }
  0x31   :  { %264 = vmatpush.msrb.mxu0 %v125_v14  ;;  %286 = vmatpush.msrb.mxu1 %v142_v15  ;;  %v49_v63 = vld [vmem:[%s594_s0 + $0x60] sm:$0xff]  ;;  %v343_v0 = vld [vmem:[%s597_s3 + $0x68] sm:$0xff]  ;;  %v340_v3 = vld [vmem:[%s597_s3 + $0x50] sm:$0xff] }
  0x32   :  { %310 = vmatpush.msrb.mxu2 %v157_v16  ;;  %252 = vmatmul.f32.vlgmr.msra.gmra.mxu3 %v40_v25  ;;  %v342_v1 = vld [vmem:[%s597_s3 + $0x60] sm:$0xff]  ;;  %v339_v4 = vld [vmem:[%s597_s3 + $0x48] sm:$0xff]  ;;  %v337_v6 = vld [vmem:[%s597_s3 + $0x38] sm:$0xff] }
  0x33   :  { %265 = vmatpush.msrb.mxu0 %v124_v18  ;;  %287 = vmatpush.msrb.mxu1 %v141_v19  ;;  %v338_v5 = vld [vmem:[%s597_s3 + $0x40] sm:$0xff]  ;;  %v336_v7 = vld [vmem:[%s597_s3 + $0x30] sm:$0xff]  ;;  %v335_v8 = vld [vmem:[%s597_s3 + $0x28] sm:$0xff] }
  0x34   :  { %311 = vmatpush.msrb.mxu2 %v156_v20  ;;  %350 = vmatpush.msrb.mxu3 %v345_v31  ;;  %v334_v9 = vld [vmem:[%s597_s3 + $0x20] sm:$0xff]  ;;  %v333_v10 = vld [vmem:[%s597_s3 + $0x18] sm:$0xff]  ;;  %v332_v11 = vld [vmem:[%s597_s3 + $0x10] sm:$0xff] }
  0x35   :  { %266 = vmatpush.msrb.mxu0 %v123_v22  ;;  %288 = vmatpush.msrb.mxu1 %v140_v23  ;;  %v331_v12 = vld [vmem:[%s597_s3 + $0x8] sm:$0xff]  ;;  %v330_v13 = vld [vmem:[%s597_s3] sm:$0xff] }
  0x36   :  { %312 = vmatpush.msrb.mxu2 %v155_v24  ;;  %351 = vmatpush.msrb.mxu3 %v344_v35  ;;  %v398_v16 = vld [vmem:[%s596_s2] ss:$0 sm:$0xff] }
  0x37   :  { %229 = vmatmul.f32.vlgmr.msra.gmra.mxu2 %v39_v26  ;;  %267 = vmatpush.msrb.mxu0 %v122_v27 }
  0x38   :  { %289 = vmatpush.msrb.mxu1 %v139_v28  ;;  %313 = vmatpush.msrb.mxu2 %v154_v29 }
  0x39   :  { %268 = vmatpush.msrb.mxu0 %v121_v30  ;;  %209 = vmatmul.f32.gmra.mxu1 %v45_v39 }
  0x3a   :  { %290 = vmatpush.msrb.mxu1 %v138_v32  ;;  %314 = vmatpush.msrb.mxu2 %v153_v33 }
  0x3b   :  { %269 = vmatpush.msrb.mxu0 %v120_v34  ;;  %255 = vmatmul.f32.gmra.mxu3 %v47_v47 }
  0x3c   :  { %291 = vmatpush.msrb.mxu1 %v137_v36  ;;  %315 = vmatpush.msrb.mxu2 %v152_v37 }
  0x3d   :  { %270 = vmatpush.msrb.mxu0 %v119_v38  ;;  %352 = vmatpush.msrb.mxu3 %v343_v0 }
  0x3e   :  { %292 = vmatpush.msrb.mxu1 %v136_v40  ;;  %316 = vmatpush.msrb.mxu2 %v151_v41 }
  0x3f   :  { %186 = vmatmul.f32.gmra.mxu0 %v44_v42  ;;  %232 = vmatmul.f32.gmra.mxu2 %v46_v43 }
  0x40   :  { %271 = vmatpush.msrb.mxu0 %v118_v44  ;;  %293 = vmatpush.msrb.mxu1 %v135_v45  ;;  %v399_v45 = vld [vmem:[%s598_s4] ss:$0 sm:$0xff] }
  0x41   :  { %317 = vmatpush.msrb.mxu2 %v150_v46  ;;  %353 = vmatpush.msrb.mxu3 %v342_v1 }
  0x42   :  { %272 = vmatpush.msrb.mxu0 %v117_v48  ;;  %294 = vmatpush.msrb.mxu1 %v134_v49 }
  0x43   :  { %318 = vmatpush.msrb.mxu2 %v149_v50  ;;  %354 = vmatpush.msrb.mxu3 %v341_v2 }
  0x44   :  { %273 = vmatpush.msrb.mxu0 %v116_v51  ;;  %295 = vmatpush.msrb.mxu1 %v133_v52 }
  0x45   :  { %319 = vmatpush.msrb.mxu2 %v148_v53  ;;  %355 = vmatpush.msrb.mxu3 %v340_v3 }
  0x46   :  { %274 = vmatpush.msrb.mxu0 %v115_v54  ;;  %296 = vmatpush.msrb.mxu1 %v132_v55 }
  0x47   :  { %320 = vmatpush.msrb.mxu2 %v147_v56  ;;  %275 = vmatmul.f32.vlgmr.msrb.gmra.mxu0 %v41_v57 }
  0x48   :  { %321 = vmatmul.f32.vlgmr.msrb.gmra.mxu2 %v43_v58  ;;  %297 = vmatpush.msrb.mxu1 %v131_v59 }
  0x49   :  { %298 = vmatmul.f32.vlgmr.msrb.gmra.mxu1 %v42_v60  ;;  %356 = vmatpush.msrb.mxu3 %v339_v4 }
  0x4b   :  { %357 = vmatpush.msrb.mxu3 %v338_v5 }
  0x4d   :  { %358 = vmatpush.msrb.mxu3 %v337_v6 }
  0x4f   :  { %278 = vmatmul.f32.gmra.mxu0 %v48_v61  ;;  %359 = vmatpush.msrb.mxu3 %v336_v7 }
  0x50   :  { %324 = vmatmul.f32.gmra.mxu2 %v50_v62 }
  0x51   :  { %301 = vmatmul.f32.gmra.mxu1 %v49_v63  ;;  %360 = vmatpush.msrb.mxu3 %v335_v8 }
  0x53   :  { %361 = vmatpush.msrb.mxu3 %v334_v9 }
  0x55   :  { %362 = vmatpush.msrb.mxu3 %v333_v10 }
  0x57   :  { %363 = vmatpush.msrb.mxu3 %v332_v11 }
  0x59   :  { %364 = vmatpush.msrb.mxu3 %v331_v12 }
  0x5b   :  { %365 = vmatpush.msrb.mxu3 %v330_v13 }
  0xa9   :  { %v184_v14 = vpop.f32.mrf.mxu0 }
  0xaa   :  { %v185_v17 = vadd.f32 %v398_v16, %v184_v14 }
  0xad   :  { %v207_v15 = vpop.f32.mrf.mxu1 }
  0xae   :  { %v208_v19 = vadd.f32 %v207_v15, %v185_v17 }
  0xb5   :  { %v253_v22 = vpop.f32.mrf.mxu3 }
  0xb6   :  { %v210_v21 = vpop.f32.mrf.mxu1 }
  0xba   :  { %v230_v18 = vpop.f32.mrf.mxu2 }
  0xbb   :  { %v231_v23 = vadd.f32 %v230_v18, %v208_v19 }
  0xbc   :  { %v187_v20 = vpop.f32.mrf.mxu0 }
  0xbd   :  { %v188_v24 = vadd.f32 %v398_v16, %v187_v20  ;;  %v254_v26 = vadd.f32 %v253_v22, %v231_v23 }
  0xbe   :  { %v256_v32 = vpop.f32.mrf.mxu3 }
  0xbf   :  { %v211_v27 = vadd.f32 %v210_v21, %v188_v24 }
  0xc2   :  { %v233_v25 = vpop.f32.mrf.mxu2 }
  0xc3   :  { %v234_v31 = vadd.f32 %v233_v25, %v211_v27 }
  0xc4   :  { %v276_v28 = vpop.f32.mrf.mxu0 }
  0xc5   :  { %v277_v29 = vadd.f32 %v276_v28, %v254_v26  ;;  %v257_v35 = vadd.f32 %v256_v32, %v234_v31 }
  0xc6   :  { %v299_v30 = vpop.f32.mrf.mxu1 }
  0xc7   :  { %v300_v33 = vadd.f32 %v299_v30, %v277_v29 }
  0xcb   :  { %v322_v34 = vpop.f32.mrf.mxu2 }
  0xcc   :  { %v323_v36 = vadd.f32 %v322_v34, %v300_v33  ;;  %v279_v37 = vpop.f32.mrf.mxu0 }
  0xcd   :  { %v280_v39 = vadd.f32 %v279_v37, %v257_v35 }
  0xce   :  { %v328_v38 = vmax.f32 %v323_v36, 0.0  ;;  %v302_v40 = vpop.f32.mrf.mxu1 }
  0xcf   :  { %v303_v41 = vadd.f32 %v302_v40, %v280_v39 }
  0xd0   :  { %366 = vmatmul.f32.vlgmr.msrb.gmra.mxu3 %v328_v38 }
  0xd3   :  { %v325_v42 = vpop.f32.mrf.mxu2 }
  0xd4   :  { %v326_v43 = vadd.f32 %v325_v42, %v303_v41 }
  0xd6   :  { %v329_v44 = vmax.f32 %v326_v43, 0.0 }
  0xd8   :  { %369 = vmatmul.f32.gmra.mxu3 %v329_v44 }
 0x153   :  { %v367_v46 = vpop.f32.mrf.mxu3 }
 0x154   :  { %v368_v47 = vadd.f32 %v399_v45, %v367_v46 }
 0x156   :  { %373 = vst [vmem:[#allocation5] sm:$0xff] %v368_v47 }
 0x15b   :  { %v370_v48 = vpop.f32.mrf.mxu3 }
 0x15c   :  { %v371_v49 = vadd.f32 %v399_v45, %v370_v48 }
 0x15e   :  { %374 = vst [vmem:[#allocation5 + $0x8] sm:$0xff] %v371_v49 }
 0x15f   :  { %387 = dma.vmem_to_hbm [thread:$0]  %s380_s13, 256, %s382_s15, [#allocation4], %s453_s23, %s453_s23, %s454_s24  }
 0x160   :  { %450 = dma.done.wait [#allocation4], 256  }
 0x161   :  { %451 = vsyncadd [#allocation4], 4294967040 }
 0x162   :  { %392 = vsyncpa [#allocation3], 1 }
 0x163   :  { %393 = vsyncpa [#allocation4], 1 }

</bundles_post_ra>
